<compile_context>
chip_gen: v7x
topology: tpu7x:2x2x1
jax: 0.10.0
libtpu: 0.0.40
codegen_flags: <defaults>
</compile_context>

<pallas_src>
import functools

import jax
import jax.numpy as jnp
from jax.experimental import pallas as pl
from jax.experimental.pallas import tpu as pltpu


def _pos_attn_kernel(mask_padding, q_ref, k_ref, v_ref, bias_ref, xres_ref,
                     gamma_ref, out_ref):
    # q_ref:   (1, TQ, Cqp)   bf16   query tile, already transposed
    # k_ref:   (1, Cqp, N_pad) bf16  keys for this batch element
    # v_ref:   (1, C,  N_pad) bf16   values for this batch element
    # bias_ref:(1, N_pad)     f32    0 for valid keys, -1e30 for padded keys
    # xres_ref:(1, C, TQ)     f32    residual slice of x
    # gamma_ref: (1, 1)       f32    SMEM scalar
    # out_ref: (1, C, TQ)     f32

    # energy[i, j] = q_i . k_j  -> (TQ, N_pad), MXU bf16 with f32 accumulation.
    energy = jax.lax.dot_general(
        q_ref[0], k_ref[0], (((1,), (0,)), ((), ())),
        preferred_element_type=jnp.float32)
    if mask_padding:  # static branch: single broadcast add, no per-tile iota
        energy = energy + bias_ref[...]

    # Row softmax: f32 max/exp, XLU lane-reduce for the denominator, then scale
    # p by the (EUP) approximate reciprocal before the bf16 cast.  No extra
    # MXU pass for the normalization.
    m = jnp.max(energy, axis=-1, keepdims=True)                 # (TQ, 1)
    p = jnp.exp(energy - m)                                     # (TQ, N_pad) f32
    denom = jnp.sum(p, axis=-1, keepdims=True)                  # (TQ, 1) f32
    p_bf = (p * pl.reciprocal(denom, approx=True)).astype(jnp.bfloat16)

    # attn_out[c, i] = sum_j v[c, j] * p[i, j]  -> (C, TQ)
    attn = jax.lax.dot_general(
        v_ref[0], p_bf, (((1,), (1,)), ((), ())),
        preferred_element_type=jnp.float32)

    out_ref[0] = (gamma_ref[0, 0] * attn + xres_ref[0]).astype(out_ref.dtype)


def position_attention(x, wq, bq, wk, bk, wv, bv, gamma, *, max_tq=None):
    """Forward pass of the PyTorch PositionAttention module.

    x: (B, C, H, W) float32.  Weights are the 1x1-conv kernels as (Cout, Cin)
    (a trailing (1, 1) is tolerated), biases as (Cout,) or (Cout, 1).
    Returns (B, C, H, W) float32.
    """
    B, C, H, W = x.shape
    N = H * W
    N_pad = ((N + 127) // 128) * 128            # lane-dense key/query axis

    Cq = wq.shape[0]
    Cqp = ((Cq + 7) // 8) * 8                   # sublane-pad the tiny q/k depth

    wq2 = wq.reshape(Cq, C).astype(jnp.float32)
    wk2 = wk.reshape(Cq, C).astype(jnp.float32)
    wv2 = wv.reshape(C, C).astype(jnp.float32)
    bq2 = bq.reshape(Cq).astype(jnp.float32)
    bk2 = bk.reshape(Cq).astype(jnp.float32)
    bv2 = bv.reshape(C).astype(jnp.float32)

    x3 = x.reshape(B, C, N).astype(jnp.float32)
    if N_pad != N:
        x3 = jnp.pad(x3, ((0, 0), (0, 0), (0, N_pad - N)))

    # ---- 1x1-conv projections hoisted to XLA (cheap vs the N^2 attention) ----
    q = jnp.einsum("oc,bcn->bon", wq2, x3) + bq2.reshape(1, Cq, 1)   # (B,Cq,Np)
    k = jnp.einsum("oc,bcn->bon", wk2, x3) + bk2.reshape(1, Cq, 1)   # (B,Cq,Np)
    v = jnp.einsum("oc,bcn->bon", wv2, x3) + bv2.reshape(1, C, 1)    # (B,C, Np)
    if Cqp != Cq:   # zero rows contribute 0 to every dot product -> exact
        q = jnp.pad(q, ((0, 0), (0, Cqp - Cq), (0, 0)))
        k = jnp.pad(k, ((0, 0), (0, Cqp - Cq), (0, 0)))
    q_t = jnp.transpose(q, (0, 2, 1)).astype(jnp.bfloat16)           # (B,Np,Cqp)
    k_bf = k.astype(jnp.bfloat16)
    v_bf = v.astype(jnp.bfloat16)

    # Additive mask row for padded key columns (used only when N_pad != N).
    col = jnp.arange(N_pad, dtype=jnp.int32).reshape(1, N_pad)
    neg_bias = jnp.where(col < N, 0.0, -1e30).astype(jnp.float32)

    gamma2d = jnp.asarray(gamma, jnp.float32).reshape(-1)[0].reshape(1, 1)

    # ---- per-generation VMEM budget and query-tile size ----
    try:
        info = pltpu.get_tpu_info()
        vmem_cap = int(getattr(info, "vmem_capacity_bytes", 64 * 1024 * 1024))
    except Exception:
        vmem_cap = 64 * 1024 * 1024
    vmem_limit = min(int(vmem_cap * 0.85), 100 * 1024 * 1024)
    vmem_limit = max(vmem_limit, 32 * 1024 * 1024)

    def _est_bytes(tq):
        score = tq * N_pad * (4 + 4 + 2)                 # energy f32 + p f32 + p bf16
        kv = 2 * (Cqp + C) * N_pad * 2                   # k/v blocks (double-buffered)
        per_q = 2 * (tq * max(Cqp, 128) * 2 + C * tq * 4)  # q_t tile + residual tile
        out = 2 * C * tq * 4
        return score + kv + per_q + out + C * tq * 4 + (2 << 20)

    TQ = 128
    for cand in (1024, 512, 256, 128):
        if N_pad % cand == 0 and _est_bytes(cand) <= int(vmem_limit * 0.8):
            TQ = cand
            break
    if max_tq is not None:          # test hook; must be a 128-multiple divisor
        TQ = min(TQ, max_tq)

    kernel = functools.partial(_pos_attn_kernel, N_pad != N)

    out = pl.pallas_call(
        kernel,
        out_shape=jax.ShapeDtypeStruct((B, C, N_pad), jnp.float32),
        grid=(B, N_pad // TQ),
        in_specs=[
            pl.BlockSpec((1, TQ, Cqp), lambda b, qi: (b, qi, 0)),     # q^T tile
            pl.BlockSpec((1, Cqp, N_pad), lambda b, qi: (b, 0, 0)),   # keys (per batch)
            pl.BlockSpec((1, C, N_pad), lambda b, qi: (b, 0, 0)),     # values (per batch)
            pl.BlockSpec((1, N_pad), lambda b, qi: (0, 0)),           # pad-mask bias row
            pl.BlockSpec((1, C, TQ), lambda b, qi: (b, 0, qi)),       # f32 residual tile
            pl.BlockSpec(memory_space=pltpu.MemorySpace.SMEM),        # gamma scalar
        ],
        out_specs=pl.BlockSpec((1, C, TQ), lambda b, qi: (b, 0, qi)),
        compiler_params=pltpu.CompilerParams(
            # No cross-step state: every (b, qi) block is independent, so both
            # axes are parallel (megacore / dual-TC friendly even at B == 1).
            dimension_semantics=("parallel", "parallel"),
            vmem_limit_bytes=vmem_limit,
        ),
    )(q_t, k_bf, v_bf, neg_bias, x3, gamma2d)

    return out[:, :, :N].reshape(B, C, H, W)


def position_attention_ref(x, wq, bq, wk, bk, wv, bv, gamma):
    """Plain-JAX f32 reference mirroring the PyTorch forward pass exactly."""
    B, C, H, W = x.shape
    N = H * W
    Cq = wq.shape[0]
    x3 = x.reshape(B, C, N)
    q = jnp.einsum("oc,bcn->bon", wq.reshape(Cq, C), x3) + bq.reshape(1, Cq, 1)
    k = jnp.einsum("oc,bcn->bon", wk.reshape(Cq, C), x3) + bk.reshape(1, Cq, 1)
    v = jnp.einsum("oc,bcn->bon", wv.reshape(C, C), x3) + bv.reshape(1, C, 1)
    energy = jnp.einsum("bci,bcj->bij", q, k)                  # (B, N, N)
    attn = jax.nn.softmax(energy, axis=-1)
    out = jnp.einsum("bcj,bij->bci", v, attn)                  # (B, C, N)
    out = jnp.asarray(gamma, jnp.float32).reshape(-1)[0] * out + x3
    return out.reshape(B, C, H, W)


def _run_case(key, B, C, H, W, max_tq=None):
    Cq = max(C // 8, 1)
    ks = jax.random.split(key, 7)
    x = jax.random.normal(ks[0], (B, C, H, W), jnp.float32)
    wq = jax.random.normal(ks[1], (Cq, C), jnp.float32) * 0.1
    bq = jax.random.normal(ks[2], (Cq, 1), jnp.float32) * 0.1
    wk = jax.random.normal(ks[3], (Cq, C), jnp.float32) * 0.1
    bk = jax.random.normal(ks[4], (Cq, 1), jnp.float32) * 0.1
    wv = jax.random.normal(ks[5], (C, C), jnp.float32) * 0.1
    bv = jax.random.normal(ks[6], (C, 1), jnp.float32) * 0.1
    # PyTorch initializes gamma to 0 (out == x); use 0.5 so the attention path
    # is actually exercised by the numeric check.
    gamma = jnp.full((1,), 0.5, jnp.float32)

    out = position_attention(x, wq, bq, wk, bk, wv, bv, gamma, max_tq=max_tq)
    out = jax.block_until_ready(out)
    ref = position_attention_ref(x, wq, bq, wk, bk, wv, bv, gamma)
    assert out.shape == (B, C, H, W)
    max_err = jnp.max(jnp.abs(out - ref))
    assert jnp.allclose(out, ref, atol=1e-2, rtol=1e-2), f"max abs err = {max_err}"


if __name__ == "__main__":
    key = jax.random.PRNGKey(0)
    k1, k2 = jax.random.split(key)
    # Case 1: N = 256 (no padding), TQ forced to 128 so the query-tile grid
    # axis has more than one step.
    _run_case(k1, B=2, C=16, H=16, W=16, max_tq=128)
    # Case 2: N = 143 -> N_pad = 256, exercises the padded-key mask path.
    _run_case(k2, B=1, C=32, H=13, W=11)
    print("KERNEL_OK")
</pallas_src>

<mosaic_0001>
module attributes {stable_mosaic.version = 11 : i64} {
  func.func @_pos_attn_kernel(%arg0: i32, %arg1: i32, %arg2: memref<1x128x8xbf16, #tpu.memory_space<vmem>>, %arg3: memref<1x8x256xbf16, #tpu.memory_space<vmem>>, %arg4: memref<1x16x256xbf16, #tpu.memory_space<vmem>>, %arg5: memref<1x256xf32, #tpu.memory_space<vmem>>, %arg6: memref<1x16x128xf32, #tpu.memory_space<vmem>>, %arg7: memref<1x1xf32, #tpu.memory_space<smem>>, %arg8: memref<1x16x128xf32, #tpu.memory_space<vmem>>) attributes {dimension_semantics = [#tpu.dimension_semantics<parallel>, #tpu.dimension_semantics<parallel>], iteration_bounds = array<i64: 2, 2>, scalar_prefetch = 0 : i64, scratch_operands = 0 : i64, tpu.core_type = #tpu.core_type<tc>, window_params = [{transform_indices = @transform_0, window_bounds = array<i64: 1, 128, 8>}, {transform_indices = @transform_1, window_bounds = array<i64: 1, 8, 256>}, {transform_indices = @transform_2, window_bounds = array<i64: 1, 16, 256>}, {pipeline_mode = #tpu.pipeline_mode<synchronous>, transform_indices = @transform_3, window_bounds = array<i64: 1, 256>}, {transform_indices = @transform_4, window_bounds = array<i64: 1, 16, 128>}, {transform_indices = @transform_5, window_bounds = array<i64: 1, 1>}, {transform_indices = @transform_6, window_bounds = array<i64: 1, 16, 128>}]} {
    %c0 = arith.constant 0 : index
    %c0_0 = arith.constant 0 : index
    %c0_1 = arith.constant 0 : index
    %0 = vector.load %arg2[%c0, %c0_0, %c0_1] : memref<1x128x8xbf16, #tpu.memory_space<vmem>>, vector<1x128x8xbf16>
    %1 = vector.shape_cast %0 : vector<1x128x8xbf16> to vector<128x8xbf16>
    %c0_2 = arith.constant 0 : index
    %c0_3 = arith.constant 0 : index
    %c0_4 = arith.constant 0 : index
    %2 = vector.load %arg3[%c0_2, %c0_3, %c0_4] : memref<1x8x256xbf16, #tpu.memory_space<vmem>>, vector<1x8x256xbf16>
    %3 = vector.shape_cast %2 : vector<1x8x256xbf16> to vector<8x256xbf16>
    %cst = arith.constant dense<0.000000e+00> : vector<128x256xf32>
    %4 = tpu.matmul %1, %3, %cst {dimension_numbers = #tpu.dot_dimension_numbers<[1], [0], [0], [1], [0, 0, 1, 1], [], []>} : vector<128x8xbf16>, vector<8x256xbf16>, vector<128x256xf32> -> vector<128x256xf32>
    %cst_5 = arith.constant dense<0xFF800000> : vector<128xf32>
    %5 = vector.multi_reduction <maximumf>, %4, %cst_5 [1] : vector<128x256xf32> to vector<128xf32>
    %6 = vector.shape_cast %5 : vector<128xf32> to vector<128x1xf32>
    %7 = vector.broadcast %6 : vector<128x1xf32> to vector<128x256xf32>
    %8 = arith.subf %4, %7 : vector<128x256xf32>
    %9 = math.exp %8 : vector<128x256xf32>
    %cst_6 = arith.constant dense<0.000000e+00> : vector<128xf32>
    %10 = vector.multi_reduction <add>, %9, %cst_6 [1] : vector<128x256xf32> to vector<128xf32>
    %11 = vector.shape_cast %10 : vector<128xf32> to vector<128x1xf32>
    %12 = tpu.reciprocal %11 {approx = true} : vector<128x1xf32> -> vector<128x1xf32>
    %13 = vector.broadcast %12 : vector<128x1xf32> to vector<128x256xf32>
    %14 = arith.mulf %9, %13 : vector<128x256xf32>
    %15 = arith.truncf %14 : vector<128x256xf32> to vector<128x256xbf16>
    %c0_7 = arith.constant 0 : index
    %c0_8 = arith.constant 0 : index
    %c0_9 = arith.constant 0 : index
    %16 = vector.load %arg4[%c0_7, %c0_8, %c0_9] : memref<1x16x256xbf16, #tpu.memory_space<vmem>>, vector<1x16x256xbf16>
    %17 = vector.shape_cast %16 : vector<1x16x256xbf16> to vector<16x256xbf16>
    %cst_10 = arith.constant dense<0.000000e+00> : vector<16x128xf32>
    %18 = tpu.matmul %17, %15, %cst_10 {dimension_numbers = #tpu.dot_dimension_numbers<[1], [1], [0], [0], [0, 0, 1, 0], [], []>} : vector<16x256xbf16>, vector<128x256xbf16>, vector<16x128xf32> -> vector<16x128xf32>
    %c0_11 = arith.constant 0 : index
    %c0_12 = arith.constant 0 : index
    %19 = memref.load %arg7[%c0_11, %c0_12] : memref<1x1xf32, #tpu.memory_space<smem>>
    %20 = vector.broadcast %19 : f32 to vector<16x128xf32>
    %21 = arith.mulf %20, %18 : vector<16x128xf32>
    %c0_13 = arith.constant 0 : index
    %c0_14 = arith.constant 0 : index
    %c0_15 = arith.constant 0 : index
    %22 = vector.load %arg6[%c0_13, %c0_14, %c0_15] : memref<1x16x128xf32, #tpu.memory_space<vmem>>, vector<1x16x128xf32>
    %23 = vector.shape_cast %22 : vector<1x16x128xf32> to vector<16x128xf32>
    %24 = arith.addf %21, %23 : vector<16x128xf32>
    %c0_16 = arith.constant 0 : index
    %c0_17 = arith.constant 0 : index
    %c0_18 = arith.constant 0 : index
    %25 = vector.load %arg8[%c0_16, %c0_17, %c0_18] : memref<1x16x128xf32, #tpu.memory_space<vmem>>, vector<1x16x128xf32>
    %26 = vector.shape_cast %25 : vector<1x16x128xf32> to vector<16x128xf32>
    %27 = vector.shape_cast %24 : vector<16x128xf32> to vector<1x16x128xf32>
    tpu.vector_store %arg8[%c0_16, %c0_17, %c0_18], %27 {strides = array<i32>} : memref<1x16x128xf32, #tpu.memory_space<vmem>>, vector<1x16x128xf32>,
    return
  }
  func.func @transform_0(%arg0: i32, %arg1: i32) -> (i32, i32, i32) {
    %c0_i32 = arith.constant 0 : i32
    %c0_i32_0 = arith.constant 0 : i32
    return %arg0, %arg1, %c0_i32 : i32, i32, i32
  }
  func.func @transform_1(%arg0: i32, %arg1: i32) -> (i32, i32, i32) {
    %c0_i32 = arith.constant 0 : i32
    %c0_i32_0 = arith.constant 0 : i32
    %c0_i32_1 = arith.constant 0 : i32
    return %arg0, %c0_i32, %c0_i32_0 : i32, i32, i32
  }
  func.func @transform_2(%arg0: i32, %arg1: i32) -> (i32, i32, i32) {
    %c0_i32 = arith.constant 0 : i32
    %c0_i32_0 = arith.constant 0 : i32
    %c0_i32_1 = arith.constant 0 : i32
    return %arg0, %c0_i32, %c0_i32_0 : i32, i32, i32
  }
  func.func @transform_3(%arg0: i32, %arg1: i32) -> (i32, i32) {
    %c0_i32 = arith.constant 0 : i32
    %c0_i32_0 = arith.constant 0 : i32
    %c0_i32_1 = arith.constant 0 : i32
    return %c0_i32, %c0_i32_0 : i32, i32
  }
  func.func @transform_4(%arg0: i32, %arg1: i32) -> (i32, i32, i32) {
    %c0_i32 = arith.constant 0 : i32
    %c0_i32_0 = arith.constant 0 : i32
    return %arg0, %c0_i32, %arg1 : i32, i32, i32
  }
  func.func @transform_5(%arg0: i32, %arg1: i32) -> (i32, i32) {
    %c0_i32 = arith.constant 0 : i32
    %c0_i32_0 = arith.constant 0 : i32
    %c0_i32_1 = arith.constant 0 : i32
    return %c0_i32, %c0_i32_0 : i32, i32
  }
  func.func @transform_6(%arg0: i32, %arg1: i32) -> (i32, i32, i32) {
    %c0_i32 = arith.constant 0 : i32
    %c0_i32_0 = arith.constant 0 : i32
    return %arg0, %c0_i32, %arg1 : i32, i32, i32
  }
}

</mosaic_0001>

<bundles_post_ra>
// kernel: tpu_custom_call.1
= control target key start
LH: loop header
LB: loop body
LE: loop exit
PB: predicated region body
PF: predicated region fallthrough
CT: control target
= control target key end

     0   :  { %s1850_s0 = inlined_call_operand.vmem [shape: bf16[2,256,8], index: 0, kind: input, shape index: {}]   ;;  %s1851_s1 = inlined_call_operand.vmem [shape: bf16[2,8,256], index: 1, kind: input, shape index: {}]   ;;  %s1852_s2 = inlined_call_operand.vmem [shape: bf16[2,16,256], index: 2, kind: input, shape index: {}]   ;;  %s1853_s3 = inlined_call_operand.vmem [shape: f32[1,256], index: 3, kind: input, shape index: {}]   ;;  %s1854_s4 = inlined_call_operand.vmem [shape: f32[2,16,256], index: 4, kind: input, shape index: {}]   ;;  %s1855_s5 = inlined_call_operand.<no memory space> [shape: f32[1,1], index: 5, kind: input, shape index: {}]   ;;  %s1856_s6 = inlined_call_operand.hbm [shape: f32[2,16,256], index: 6, kind: output, shape index: {}]  }
   0x1   :  { %11 = sst [smem:[#allocation2]] %s1855_s5 }
   0x2   :  { %12 = vsyncpa [#allocation5], 0 }
   0x3   :  { %14 = vsyncpa [#allocation5 + $0x1], 0  ;;  %s1418_s23 = smov 0   ;;  %s1420_s24 = smov 0  }
   0x4   :  { %s1422_s3 = smov 0   ;;  %s1424_s25 = smov 0  }
   0x5   :  { %s1426_s26 = smov 0   ;;  %s1428_s27 = smov 0  }
   0x6   :  { %s1430_s28 = smov 0   ;;  %s1432_s29 = smov 0  }
   0x7 LB: > { %s1050_s5 = sadd.s32 4294967295, %s1373_s29   ;;  %s1051_s30 = sadd.s32 4294967294, %s1373_s29   ;;  %s1373_s29 = sphi %s1432_s29, %s20_s29   ;;  %s1369_s28 = sphi %s1430_s28, %s1866_s28   ;;  %s1365_s27 = sphi %s1428_s27, %s1865_s27   ;;  %s1361_s26 = sphi %s1426_s26, %s1864_s26   ;;  %s1357_s25 = sphi %s1424_s25, %s1863_s25   ;;  %s1353_s3 = sphi %s1422_s3, %s1862_s3   ;;  %s1349_s24 = sphi %s1420_s24, %s1861_s24   ;;  %s1345_s23 = sphi %s1418_s23, %s1860_s23  }
   0x8   : > { %s29_s7 = sadd.s32 1, %s1365_s27  ;;  %s32_s8 = sadd.s32 1, %s1369_s28 }
   0x9   : > { %p30_p0 = scmp.ge.s32.totalorder %s29_s7, 2  ;;  %p149_p1 = scmp.ne.s32.totalorder %s1353_s3, %s1349_s24 }
   0xa   : > { %p150_p2 = scmp.eq.s32.totalorder %s1373_s29, 0  ;;  %p202_p5 = scmp.eq.s32.totalorder %s1050_s5, 3 }
   0xb   : > { %s1868_s7 = smov (%p30_p0, %s29_s7), 0  ;;  %s1870_s8 = smov (!%p30_p0, %s32_s8), %s1369_s28 }
   0xc   : > { %s138_s9 = ssub.s32 %s1365_s27, %s1868_s7  ;;  %p1470_p3 = por %p150_p2, %p149_p1 }
   0xd   : > { %p34_p4 = scmp.ge.s32.totalorder %s1870_s8, 2  ;;  %p207_p6 = scmp.ne.s32.totalorder %s1349_s24, %s1345_s23 }
   0xe   : > { %p208_p7 = scmp.eq.s32.totalorder %s1051_s30, 3  ;;  %p1478_p8 = por %p202_p5, %p149_p1 }
   0xf   : > { %s1872_s8 = smov (%p34_p4, %s1870_s8), 0  ;;  %s142_s15 = sadd.s32 1, %s1353_s3 }
  0x10   : > { %p1482_p9 = por %p208_p7, %p207_p6  ;;  %s137_s13 = ssub.s32 %s1369_s28, %s1872_s8 }
  0x11   : > { %s139_s14 = sor.u32 %s138_s9, %s137_s13  ;;  %p1053_p11 = scmp.ge.s32.totalorder %s1373_s29, 4 }
  0x12   : > { %p140_p10 = scmp.eq.s32.totalorder %s139_s14, 0 }
  0x13   : > { %230 = sbr.rel (%p1053_p11) target bundleno = 33 (0x21), region = 24 }
  0x14   : > { %s1490_s16 = scalar_select %p140_p10, %s1353_s3, %s142_s15  }
  0x1a   : > { %262 = sbr.rel (!%p1470_p3) target bundleno = 33 (0x21), region = 40  ;;  %s264_s17 = sand.u32 (%p1470_p3), 1, %s1353_s3  }
  0x1b   : > { %s1055_s18 = sshll.u32 (%p1470_p3), %s1369_s28, 2  ;;  %s1054_s19 = sshll.u32 (%p1470_p3), %s264_s17, 4 }
  0x1c   : > { %s268_s20 = sadd.s32 (%p1470_p3), %s1365_s27, %s1055_s18  ;;  %s266_s9 = scalar_lea.vmem (%p1470_p3), [#allocation3], %s1054_s19 }
  0x1d   : > { %s1056_s21 = sshll.u32 (%p1470_p3), %s268_s20, 3 }
  0x1e   : > { %s270_s30 = scalar_lea.vmem (%p1470_p3), %s1854_s4, %s1056_s21 }
  0x1f   : > { %v300_v0 = vld [vmem:[%s270_s30] sm:$0xff] (%p1470_p3)  ;;  %v302_v1 = vld [vmem:[%s270_s30 + $0x10] sm:$0xff] (%p1470_p3) }
  0x20   : > { %301 = vst [vmem:[%s266_s9] sm:$0xff] (%p1470_p3), %v300_v0  ;;  %303 = vst [vmem:[%s266_s9 + $0x8] sm:$0xff] (%p1470_p3), %v302_v1 }
  0x21 PF: > { %p1057_p12 = scmp.ge.s32.totalorder %s1373_s29, 1  ;;  %p308_p13 = scmp.lt.s32.totalorder %s1373_s29, 5 }
  0x23   : > { %p309_p0 = pnand %p1057_p12, %p308_p13 }
  0x24   : > { %s1060_s10 = sshll.u32 (!%p309_p0), %s1357_s25, 4  ;;  %p364_p1 = scmp.lt.s32.totalorder (!%p309_p0), %s1361_s26, 1  ;;  %v1375_v2 = vmov (!%p309_p0), 0   ;;  %vm471_vm0 = vcmask (!%p309_p0), 1043456   ;;  %vm446_vm1 = vcmask (!%p309_p0), 64512  }
  0x25   : > { %312 = sbr.rel (%p309_p0) target bundleno = 889 (0x379), region = 78  ;;  %p366_p2 = scmp.lt.s32.totalorder (!%p309_p0), %s1060_s10, 31  ;;  %510 = vmatprep.mubr.bf16.mxu0 (!%p309_p0), %v1375_v2 }
  0x26   : > { %s1089_s19 = sshll.u32 (!%p309_p0), %s1361_s26, 2 }
  0x2c   : > { %s1506_s13 = scalar_select %p364_p1, %s1361_s26, 1 }
  0x2d   : > { %s1874_s10 = smov (!%p366_p2, %s1060_s10), 31 }
  0x2e   : > { %s1061_s14 = sshll.u32 %s1506_s13, 5  ;;  %s1093_s15 = sshll.u32 %s1506_s13, 3 }
  0x2f   : > { %s369_s17 = sadd.s32 %s1061_s14, %s1874_s10  ;;  %s377_s20 = scalar_lea.vmem %s1851_s1, %s1093_s15 }
  0x30   : > { %s1062_s21 = sshll.u32 %s369_s17, 2  ;;  %v400_v3 = vld [vmem:[%s377_s20] sm:$0xff]  ;;  %s1094_s9 = sshll.u32 %s1506_s13, 4 }
  0x31   : > { %s371_s30 = scalar_lea.vmem %s1850_s0, %s1062_s21  ;;  %v1076_v4 = vcombine.high %v400_v3, %v400_v3  ;;  %v1075_v5 = vcombine.low %v400_v3, %v400_v3  ;;  %s1752_s15 = scalar_lea.vmem %s1852_s2, %s1094_s9 }
  0x32   : > { %v1172_v7 = vld [vmem:[%s371_s30] sm:$0xff]   ;;  %v1173_v8 = vld [vmem:[%s371_s30 + $0x8] sm:$0xff]   ;;  %v1174_v9 = vld [vmem:[%s371_s30 + $0x10] sm:$0xff]   ;;  %s900_s13 = sld [smem:[#allocation2]]  ;;  %s315_s17 = sand.u32 1, %s1349_s24  }
  0x33   : > { %1077 = vmatprep.subr.msk.bf16.mxu0 %vm471_vm0, %v1076_v4  ;;  %v473_v6 = vsel %vm471_vm0, %v1075_v5, 0  ;;  %v1175_v10 = vld [vmem:[%s371_s30 + $0x18] sm:$0xff]   ;;  %v1176_v11 = vld [vmem:[%s371_s30 + $0x20] sm:$0xff]   ;;  %v1177_v12 = vld [vmem:[%s371_s30 + $0x28] sm:$0xff]   ;;  %s1058_s18 = sshll.u32 %s315_s17, 4  ;;  %s922_s20 = sadd.s32 %s1357_s25, %s1089_s19 }
  0x34   : > { %479 = vmatpush1.bf16.msra.mxu0 %v473_v6  ;;  %v1178_v13 = vld [vmem:[%s371_s30 + $0x30] sm:$0xff]   ;;  %v1179_v14 = vld [vmem:[%s371_s30 + $0x38] sm:$0xff]   ;;  %s317_s21 = scalar_lea.vmem [#allocation3], %s1058_s18  ;;  %s362_s22 = scalar_lea.vmem [#allocation4], %s1058_s18 }
  0x35   : > { %s925_s5 = sshll.u32 %s362_s22, 4  ;;  %s1090_s30 = sshll.u32 %s922_s20, 7  ;;  %s1791_s5 = int_to_ptr.vmem [resolvable:$true] %s925_s5 }
  0x36   : > { %s1796_s9 = scalar_lea.hbm %s1856_s6, %s1090_s30  ;;  %s1798_s10 = scalar_lea.sflag [#allocation5], %s315_s17 }
  0x37   : > { %1078 = vmatmul.mubr.msk.bf16.vlgmr.msra.gmra.mrb[0].mxu0 %vm446_vm1, %v1172_v7  ;;  %s1279_s14 = scalar_lea.vmem %s1791_s5, 256 }
  0x38   : > { %520 = vmatprep.mubr.bf16.mxu0 %v1375_v2  ;;  %p1280_p3 = scmp.ne.s32.totalorder %s1791_s5, %s1279_s14 }
  0x3a   : > { %p1281_p4 = pnand %p1280_p3, %p1478_p8 }
  0x3c   : > { %p1282_p5 = pneg %p1281_p4 }
  0x3f   : > { %1079 = vmatmul.mubr.msk.bf16.gmra.mrb[4].mxu0 %vm446_vm1, %v1173_v8 }
  0x40   : > { %530 = vmatprep.mubr.bf16.mxu0 %v1375_v2 }
  0x47   : > { %1080 = vmatmul.mubr.msk.bf16.gmra.mrb[8].mxu0 %vm446_vm1, %v1174_v9 }
  0x48   : > { %540 = vmatprep.mubr.bf16.mxu0 %v1375_v2 }
  0x4f   : > { %1081 = vmatmul.mubr.msk.bf16.gmra.mrb[12].mxu0 %vm446_vm1, %v1175_v10 }
  0x50   : > { %550 = vmatprep.mubr.bf16.mxu0 %v1375_v2 }
  0x57   : > { %1082 = vmatmul.mubr.msk.bf16.gmra.mrb[16].mxu0 %vm446_vm1, %v1176_v11 }
  0x58   : > { %560 = vmatprep.mubr.bf16.mxu0 %v1375_v2 }
  0x5f   : > { %1083 = vmatmul.mubr.msk.bf16.gmra.mrb[20].mxu0 %vm446_vm1, %v1177_v12 }
  0x60   : > { %570 = vmatprep.mubr.bf16.mxu0 %v1375_v2 }
  0x67   : > { %1084 = vmatmul.mubr.msk.bf16.gmra.mrb[24].mxu0 %vm446_vm1, %v1178_v13 }
  0x68   : > { %580 = vmatprep.mubr.bf16.mxu0 %v1375_v2 }
  0x6f   : > { %1085 = vmatmul.mubr.msk.bf16.gmra.mrb[28].mxu0 %vm446_vm1, %v1179_v14 }
 0x10a   : > { %v1524_v15 = vpop.f32.mrb[0].mxu0 }
 0x10b   : > { %v1526_v16 = vpop.f32.mrb[1].mxu0 }
 0x10c   : > { %v1528_v17 = vpop.f32.mrb[2].mxu0  ;;  %v591_v18 = vmax.f32 %v1524_v15, %v1526_v16 }
 0x10d   : > { %v1532_v19 = vpop.f32.mrb[3].mxu0 }
 0x10e   : > { %592 = vmax.xlane.f32.xlu0 %v591_v18  ;;  %v594_v20 = vmax.f32 %v1528_v17, %v1532_v19 }
 0x112   : > { %595 = vmax.xlane.f32.xlu0 %v594_v20  ;;  %v1536_v21 = vpop.f32.mrb[4].mxu0 }
 0x113   : > { %v1538_v22 = vpop.f32.mrb[5].mxu0 }
 0x114   : > { %v1540_v23 = vpop.f32.mrb[6].mxu0  ;;  %v597_v24 = vmax.f32 %v1536_v21, %v1538_v22 }
 0x115   : > { %v1544_v25 = vpop.f32.mrb[7].mxu0 }
 0x116   : > { %598 = vmax.xlane.f32.xlu1 %v597_v24  ;;  %v600_v26 = vmax.f32 %v1540_v23, %v1544_v25 }
 0x11a   : > { %601 = vmax.xlane.f32.xlu1 %v600_v26  ;;  %v1548_v27 = vpop.f32.mrb[8].mxu0 }
 0x11b   : > { %v1550_v28 = vpop.f32.mrb[9].mxu0 }
 0x11c   : > { %v1552_v29 = vpop.f32.mrb[10].mxu0  ;;  %v603_v30 = vmax.f32 %v1548_v27, %v1550_v28 }
 0x11d   : > { %v1556_v31 = vpop.f32.mrb[11].mxu0 }
 0x11e   : > { %604 = vmax.xlane.f32.xlu0 %v603_v30  ;;  %v606_v32 = vmax.f32 %v1552_v29, %v1556_v31 }
 0x120   : > { %607 = vmax.xlane.f32.xlu1 %v606_v32 }
 0x122   : > { %v1560_v33 = vpop.f32.mrb[12].mxu0 }
 0x123   : > { %v1562_v34 = vpop.f32.mrb[13].mxu0 }
 0x124   : > { %v1564_v35 = vpop.f32.mrb[14].mxu0  ;;  %v609_v36 = vmax.f32 %v1560_v33, %v1562_v34 }
 0x125   : > { %v1568_v37 = vpop.f32.mrb[15].mxu0 }
 0x126   : > { %610 = vmax.xlane.f32.xlu0 %v609_v36  ;;  %v612_v38 = vmax.f32 %v1564_v35, %v1568_v37 }
 0x128   : > { %613 = vmax.xlane.f32.xlu1 %v612_v38 }
 0x12a   : > { %v1572_v39 = vpop.f32.mrb[16].mxu0 }
 0x12b   : > { %v1574_v40 = vpop.f32.mrb[17].mxu0 }
 0x12c   : > { %v1576_v41 = vpop.f32.mrb[18].mxu0  ;;  %v615_v42 = vmax.f32 %v1572_v39, %v1574_v40 }
 0x12d   : > { %v1580_v43 = vpop.f32.mrb[19].mxu0 }
 0x12e   : > { %616 = vmax.xlane.f32.xlu0 %v615_v42  ;;  %v618_v44 = vmax.f32 %v1576_v41, %v1580_v43 }
 0x130   : > { %619 = vmax.xlane.f32.xlu1 %v618_v44 }
 0x132   : > { %v1584_v45 = vpop.f32.mrb[20].mxu0 }
 0x133   : > { %v1586_v46 = vpop.f32.mrb[21].mxu0 }
 0x134   : > { %v1588_v47 = vpop.f32.mrb[22].mxu0  ;;  %v621_v48 = vmax.f32 %v1584_v45, %v1586_v46 }
 0x135   : > { %v1592_v49 = vpop.f32.mrb[23].mxu0 }
 0x136   : > { %622 = vmax.xlane.f32.xlu0 %v621_v48  ;;  %v624_v50 = vmax.f32 %v1588_v47, %v1592_v49 }
 0x138   : > { %625 = vmax.xlane.f32.xlu1 %v624_v50 }
 0x13a   : > { %v1596_v51 = vpop.f32.mrb[24].mxu0 }
 0x13b   : > { %v1598_v52 = vpop.f32.mrb[25].mxu0 }
 0x13c   : > { %v1600_v53 = vpop.f32.mrb[26].mxu0  ;;  %v627_v54 = vmax.f32 %v1596_v51, %v1598_v52 }
 0x13d   : > { %v1604_v55 = vpop.f32.mrb[27].mxu0 }
 0x13e   : > { %628 = vmax.xlane.f32.xlu0 %v627_v54  ;;  %v630_v56 = vmax.f32 %v1600_v53, %v1604_v55 }
 0x140   : > { %631 = vmax.xlane.f32.xlu1 %v630_v56 }
 0x142   : > { %v1608_v57 = vpop.f32.mrb[28].mxu0 }
 0x143   : > { %v1610_v58 = vpop.f32.mrb[29].mxu0 }
 0x144   : > { %v1612_v59 = vpop.f32.mrb[30].mxu0  ;;  %v633_v60 = vmax.f32 %v1608_v57, %v1610_v58 }
 0x145   : > { %v1616_v61 = vpop.f32.mrb[31].mxu0 }
 0x146   : > { %v636_v62 = vmax.f32 %v1612_v59, %v1616_v61  ;;  %634 = vmax.xlane.f32.xlu0 %v633_v60 }
 0x148   : > { %637 = vmax.xlane.f32.xlu1 %v636_v62 }
 0x19b   : > { %v593_v63 = vpop.xlane.xlu0 %592 }
 0x19c   : > { %v639_v0 = vsub.f32 %v1524_v15, %v593_v63  ;;  %v640_v1 = vsub.f32 %v1526_v16, %v593_v63 }
 0x19e   : > { %v671_v2 = vmul.f32 1.442695, %v639_v0  ;;  %v673_v3 = vmul.f32 1.442695, %v640_v1 }
 0x19f   : > { %v596_v4 = vpop.xlane.xlu0 %595 }
 0x1a0   : > { %1183 = vpow2.f32 %v671_v2  ;;  %v641_v5 = vsub.f32 %v1528_v17, %v596_v4  ;;  %v642_v6 = vsub.f32 %v1532_v19, %v596_v4 }
 0x1a1   : > { %1185 = vpow2.f32 %v673_v3 }
 0x1a2   : > { %v675_v7 = vmul.f32 1.442695, %v641_v5  ;;  %v677_v8 = vmul.f32 1.442695, %v642_v6 }
 0x1a3   : > { %v599_v9 = vpop.xlane.xlu1 %598 }
 0x1a4   : > { %1187 = vpow2.f32 %v675_v7  ;;  %v643_v10 = vsub.f32 %v1536_v21, %v599_v9  ;;  %v644_v11 = vsub.f32 %v1538_v22, %v599_v9 }
 0x1a5   : > { %1189 = vpow2.f32 %v677_v8 }
 0x1a6   : > { %v679_v12 = vmul.f32 1.442695, %v643_v10  ;;  %v681_v13 = vmul.f32 1.442695, %v644_v11 }
 0x1a7   : > { %v602_v14 = vpop.xlane.xlu1 %601 }
 0x1a8   : > { %1191 = vpow2.f32 %v679_v12  ;;  %v645_v15 = vsub.f32 %v1540_v23, %v602_v14  ;;  %v646_v16 = vsub.f32 %v1544_v25, %v602_v14 }
 0x1a9   : > { %1193 = vpow2.f32 %v681_v13 }
 0x1aa   : > { %v1628_v17 = vpop.eup %1183  ;;  %v683_v18 = vmul.f32 1.442695, %v645_v15  ;;  %v685_v19 = vmul.f32 1.442695, %v646_v16 }
 0x1ab   : > { %v1630_v20 = vpop.eup %1185  ;;  %v605_v24 = vpop.xlane.xlu0 %604 }
 0x1ac   : > { %1195 = vpow2.f32 %v683_v18  ;;  %v647_v21 = vsub.f32 %v1548_v27, %v605_v24  ;;  %v648_v22 = vsub.f32 %v1550_v28, %v605_v24  ;;  %v735_v26 = vadd.f32 %v1630_v20, %v1628_v17 }
 0x1ad   : > { %1197 = vpow2.f32 %v685_v19  ;;  %v608_v23 = vpop.xlane.xlu1 %607 }
 0x1ae   : > { %v1636_v30 = vpop.eup %1187  ;;  %v687_v25 = vmul.f32 1.442695, %v647_v21  ;;  %v689_v32 = vmul.f32 1.442695, %v648_v22  ;;  %v649_v36 = vsub.f32 %v1552_v29, %v608_v23  ;;  %v650_v38 = vsub.f32 %v1556_v31, %v608_v23  ;;  %736 = vadd.xlane.f32.xlu0 %v735_v26 }
 0x1af   : > { %v1640_v42 = vpop.eup %1189 }
 0x1b0   : > { %1199 = vpow2.f32 %v687_v25  ;;  %v691_v27 = vmul.f32 1.442695, %v649_v36  ;;  %v693_v44 = vmul.f32 1.442695, %v650_v38  ;;  %v738_v28 = vadd.f32 %v1640_v42, %v1636_v30 }
 0x1b1   : > { %1201 = vpow2.f32 %v689_v32 }
 0x1b2   : > { %v1644_v48 = vpop.eup %1191  ;;  %1203 = vpow2.f32 %v691_v27  ;;  %739 = vadd.xlane.f32.xlu1 %v738_v28 }
 0x1b3   : > { %v1646_v50 = vpop.eup %1193  ;;  %1205 = vpow2.f32 %v693_v44  ;;  %v611_v29 = vpop.xlane.xlu0 %610 }
 0x1b4   : > { %v651_v31 = vsub.f32 %v1560_v33, %v611_v29  ;;  %v652_v54 = vsub.f32 %v1562_v34, %v611_v29  ;;  %v741_v56 = vadd.f32 %v1646_v50, %v1644_v48 }
 0x1b5   : > { %v614_v60 = vpop.xlane.xlu1 %613 }
 0x1b6   : > { %v1652_v62 = vpop.eup %1195  ;;  %v695_v63 = vmul.f32 1.442695, %v651_v31  ;;  %v697_v0 = vmul.f32 1.442695, %v652_v54  ;;  %v653_v1 = vsub.f32 %v1564_v35, %v614_v60  ;;  %v654_v2 = vsub.f32 %v1568_v37, %v614_v60  ;;  %742 = vadd.xlane.f32.xlu0 %v741_v56 }
 0x1b7   : > { %v1656_v3 = vpop.eup %1197 }
 0x1b8   : > { %1207 = vpow2.f32 %v695_v63  ;;  %v699_v4 = vmul.f32 1.442695, %v653_v1  ;;  %v701_v33 = vmul.f32 1.442695, %v654_v2  ;;  %v744_v34 = vadd.f32 %v1656_v3, %v1652_v62 }
 0x1b9   : > { %1209 = vpow2.f32 %v697_v0 }
 0x1ba   : > { %v1660_v5 = vpop.eup %1199  ;;  %1211 = vpow2.f32 %v699_v4  ;;  %745 = vadd.xlane.f32.xlu1 %v744_v34 }
 0x1bb   : > { %v1662_v6 = vpop.eup %1201  ;;  %1213 = vpow2.f32 %v701_v33  ;;  %v617_v35 = vpop.xlane.xlu0 %616 }
 0x1bc   : > { %v1664_v7 = vpop.eup %1203  ;;  %v655_v37 = vsub.f32 %v1572_v39, %v617_v35  ;;  %v656_v8 = vsub.f32 %v1574_v40, %v617_v35  ;;  %v747_v9 = vadd.f32 %v1662_v6, %v1660_v5 }
 0x1bd   : > { %v1670_v10 = vpop.eup %1205  ;;  %v620_v11 = vpop.xlane.xlu1 %619 }
 0x1be   : > { %v703_v12 = vmul.f32 1.442695, %v655_v37  ;;  %v705_v13 = vmul.f32 1.442695, %v656_v8  ;;  %v657_v14 = vsub.f32 %v1576_v41, %v620_v11  ;;  %v658_v15 = vsub.f32 %v1580_v43, %v620_v11  ;;  %748 = vadd.xlane.f32.xlu0 %v747_v9 }
 0x1bf   : > { %v750_v16 = vadd.f32 %v1670_v10, %v1664_v7 }
 0x1c0   : > { %1215 = vpow2.f32 %v703_v12  ;;  %v707_v39 = vmul.f32 1.442695, %v657_v14  ;;  %v709_v18 = vmul.f32 1.442695, %v658_v15 }
 0x1c1   : > { %1217 = vpow2.f32 %v705_v13  ;;  %751 = vadd.xlane.f32.xlu1 %v750_v16 }
 0x1c2   : > { %v1676_v40 = vpop.eup %1207  ;;  %1219 = vpow2.f32 %v707_v39 }
 0x1c3   : > { %v1678_v19 = vpop.eup %1209  ;;  %1221 = vpow2.f32 %v709_v18  ;;  %v623_v24 = vpop.xlane.xlu0 %622 }
 0x1c4   : > { %v1680_v21 = vpop.eup %1211  ;;  %v659_v41 = vsub.f32 %v1584_v45, %v623_v24  ;;  %v660_v43 = vsub.f32 %v1586_v46, %v623_v24  ;;  %v753_v22 = vadd.f32 %v1678_v19, %v1676_v40 }
 0x1c5   : > { %v1686_v26 = vpop.eup %1213  ;;  %v626_v23 = vpop.xlane.xlu1 %625 }
 0x1c6   : > { %v711_v25 = vmul.f32 1.442695, %v659_v41  ;;  %v713_v32 = vmul.f32 1.442695, %v660_v43  ;;  %v661_v36 = vsub.f32 %v1588_v47, %v626_v23  ;;  %v662_v38 = vsub.f32 %v1592_v49, %v626_v23  ;;  %754 = vadd.xlane.f32.xlu0 %v753_v22 }
 0x1c7   : > { %v756_v27 = vadd.f32 %v1686_v26, %v1680_v21 }
 0x1c8   : > { %1223 = vpow2.f32 %v711_v25  ;;  %v715_v45 = vmul.f32 1.442695, %v661_v36  ;;  %v717_v44 = vmul.f32 1.442695, %v662_v38  ;;  %v1182_v38 = vld [vmem:[%s1752_s15 + $0x4] ss:$8 sps:$4 sm:$0xff]  }
 0x1c9   : > { %1225 = vpow2.f32 %v713_v32  ;;  %757 = vadd.xlane.f32.xlu1 %v756_v27  ;;  %891 = vmatprep.mubr.bf16.mxu1 %v1182_v38 }
 0x1ca   : > { %v1692_v46 = vpop.eup %1215  ;;  %1227 = vpow2.f32 %v715_v45 }
 0x1cb   : > { %v1694_v28 = vpop.eup %1217  ;;  %1229 = vpow2.f32 %v717_v44  ;;  %v629_v29 = vpop.xlane.xlu0 %628 }
 0x1cc   : > { %v1696_v31 = vpop.eup %1219  ;;  %v663_v47 = vsub.f32 %v1596_v51, %v629_v29  ;;  %v664_v49 = vsub.f32 %v1598_v52, %v629_v29  ;;  %v759_v54 = vadd.f32 %v1694_v28, %v1692_v46 }
 0x1cd   : > { %v1702_v56 = vpop.eup %1221  ;;  %v632_v60 = vpop.xlane.xlu1 %631 }
 0x1ce   : > { %v719_v63 = vmul.f32 1.442695, %v663_v47  ;;  %v721_v0 = vmul.f32 1.442695, %v664_v49  ;;  %v665_v1 = vsub.f32 %v1600_v53, %v632_v60  ;;  %v666_v2 = vsub.f32 %v1604_v55, %v632_v60  ;;  %760 = vadd.xlane.f32.xlu0 %v759_v54 }
 0x1cf   : > { %v762_v4 = vadd.f32 %v1702_v56, %v1696_v31 }
 0x1d0   : > { %1231 = vpow2.f32 %v719_v63  ;;  %v723_v51 = vmul.f32 1.442695, %v665_v1  ;;  %v725_v33 = vmul.f32 1.442695, %v666_v2 }
 0x1d1   : > { %1233 = vpow2.f32 %v721_v0  ;;  %763 = vadd.xlane.f32.xlu1 %v762_v4 }
 0x1d2   : > { %v1708_v52 = vpop.eup %1223  ;;  %1235 = vpow2.f32 %v723_v51 }
 0x1d3   : > { %v1710_v34 = vpop.eup %1225  ;;  %1237 = vpow2.f32 %v725_v33  ;;  %v635_v35 = vpop.xlane.xlu0 %634 }
 0x1d4   : > { %v1712_v37 = vpop.eup %1227  ;;  %v667_v53 = vsub.f32 %v1608_v57, %v635_v35  ;;  %v668_v55 = vsub.f32 %v1610_v58, %v635_v35  ;;  %v765_v8 = vadd.f32 %v1710_v34, %v1708_v52 }
 0x1d5   : > { %v1718_v9 = vpop.eup %1229  ;;  %v638_v11 = vpop.xlane.xlu1 %637 }
 0x1d6   : > { %v727_v12 = vmul.f32 1.442695, %v667_v53  ;;  %v729_v13 = vmul.f32 1.442695, %v668_v55  ;;  %766 = vadd.xlane.f32.xlu0 %v765_v8  ;;  %v669_v14 = vsub.f32 %v1612_v59, %v638_v11  ;;  %v670_v15 = vsub.f32 %v1616_v61, %v638_v11 }
 0x1d7   : > { %v768_v16 = vadd.f32 %v1718_v9, %v1712_v37 }
 0x1d8   : > { %1239 = vpow2.f32 %v727_v12  ;;  %v731_v57 = vmul.f32 1.442695, %v669_v14  ;;  %v733_v39 = vmul.f32 1.442695, %v670_v15 }
 0x1d9   : > { %1241 = vpow2.f32 %v729_v13  ;;  %769 = vadd.xlane.f32.xlu1 %v768_v16 }
 0x1da   : > { %v1724_v58 = vpop.eup %1231  ;;  %1243 = vpow2.f32 %v731_v57 }
 0x1db   : > { %v1726_v18 = vpop.eup %1233  ;;  %1245 = vpow2.f32 %v733_v39 }
 0x1dc   : > { %v1728_v24 = vpop.eup %1235  ;;  %v771_v59 = vadd.f32 %v1726_v18, %v1724_v58 }
 0x1dd   : > { %v1732_v61 = vpop.eup %1237 }
 0x1de   : > { %772 = vadd.xlane.f32.xlu0 %v771_v59  ;;  %v774_v41 = vadd.f32 %v1732_v61, %v1728_v24 }
 0x1e0   : > { %775 = vadd.xlane.f32.xlu1 %v774_v41 }
 0x1e2   : > { %v1736_v43 = vpop.eup %1239 }
 0x1e3   : > { %v1738_v22 = vpop.eup %1241 }
 0x1e4   : > { %v1740_v23 = vpop.eup %1243  ;;  %v777_v25 = vadd.f32 %v1738_v22, %v1736_v43 }
 0x1e5   : > { %v1744_v32 = vpop.eup %1245 }
 0x1e6   : > { %778 = vadd.xlane.f32.xlu0 %v777_v25  ;;  %v780_v36 = vadd.f32 %v1744_v32, %v1740_v23 }
 0x1e8   : > { %781 = vadd.xlane.f32.xlu1 %v780_v36 }
 0x23b   : > { %v737_v27 = vpop.xlane.xlu0 %736 }
 0x23c   : > { %1247 = vrcp.f32 %v737_v27 }
 0x23f   : > { %v740_v45 = vpop.xlane.xlu1 %739 }
 0x240   : > { %1249 = vrcp.f32 %v740_v45 }
 0x243   : > { %v743_v44 = vpop.xlane.xlu0 %742 }
 0x244   : > { %1251 = vrcp.f32 %v743_v44 }
 0x246   : > { %v1248_v47 = vpop.eup %1247 }
 0x247   : > { %v746_v29 = vpop.xlane.xlu1 %745  ;;  %v800_v60 = vmul.f32 %v1248_v47, %v1630_v20  ;;  %v799_v0 = vmul.f32 %v1248_v47, %v1628_v17 }
 0x248   : > { %1253 = vrcp.f32 %v746_v29 }
 0x24a   : > { %v1250_v49 = vpop.eup %1249 }
 0x24b   : > { %v749_v54 = vpop.xlane.xlu0 %748  ;;  %v802_v63 = vmul.f32 %v1250_v49, %v1640_v42  ;;  %v801_v1 = vmul.f32 %v1250_v49, %v1636_v30 }
 0x24c   : > { %1255 = vrcp.f32 %v749_v54 }
 0x24d   : > { %v832_v2 = vpack.c.bf16 %v802_v63, %v800_v60  ;;  %v831_v4 = vpack.c.bf16 %v801_v1, %v799_v0 }
 0x24e   : > { %v752_v51 = vpop.xlane.xlu1 %751  ;;  %v1252_v33 = vpop.eup %1251 }
 0x24f   : > { %1257 = vrcp.f32 %v752_v51  ;;  %859 = vmatprep.subr.bf16.mxu1 %v832_v2  ;;  %v804_v55 = vmul.f32 %v1252_v33, %v1646_v50  ;;  %v803_v42 = vmul.f32 %v1252_v33, %v1644_v48 }
 0x250   : > { %860 = vmatpush1.bf16.xpose.msra.mxu1 %v831_v4 }
 0x252   : > { %v1254_v35 = vpop.eup %1253 }
 0x253   : > { %v755_v53 = vpop.xlane.xlu0 %754  ;;  %v806_v20 = vmul.f32 %v1254_v35, %v1656_v3  ;;  %v805_v17 = vmul.f32 %v1254_v35, %v1652_v62 }
 0x254   : > { %1259 = vrcp.f32 %v755_v53 }
 0x255   : > { %v834_v30 = vpack.c.bf16 %v806_v20, %v804_v55  ;;  %v833_v8 = vpack.c.bf16 %v805_v17, %v803_v42 }
 0x256   : > { %v758_v11 = vpop.xlane.xlu1 %757  ;;  %v1256_v12 = vpop.eup %1255 }
 0x257   : > { %1261 = vrcp.f32 %v758_v11  ;;  %861 = vmatprep.subr.bf16.mxu1 %v834_v30  ;;  %v808_v14 = vmul.f32 %v1256_v12, %v1662_v6  ;;  %v807_v48 = vmul.f32 %v1256_v12, %v1660_v5  ;;  %v901_v30 = vstv %s900_s13  ;;  %v905_v11 = vld [vmem:[%s317_s21 + $0x8] sm:$0xff] }
 0x258   : > { %862 = vmatpush1.bf16.xpose.msra.mxu1 %v833_v8 }
 0x259   : > { %v1258_v13 = vpop.eup %1257 }
 0x25a   : > { %v810_v15 = vmul.f32 %v1258_v13, %v1670_v10  ;;  %v809_v50 = vmul.f32 %v1258_v13, %v1664_v7 }
 0x25b   : > { %v761_v3 = vpop.xlane.xlu0 %760 }
 0x25c   : > { %v836_v16 = vpack.c.bf16 %v810_v15, %v808_v14  ;;  %1263 = vrcp.f32 %v761_v3  ;;  %v835_v57 = vpack.c.bf16 %v809_v50, %v807_v48 }
 0x25e   : > { %863 = vmatprep.subr.bf16.mxu1 %v836_v16  ;;  %v764_v62 = vpop.xlane.xlu1 %763  ;;  %v1260_v39 = vpop.eup %1259 }
 0x25f   : > { %1265 = vrcp.f32 %v764_v62  ;;  %v812_v41 = vmul.f32 %v1260_v39, %v1678_v19  ;;  %v811_v36 = vmul.f32 %v1260_v39, %v1676_v40 }
 0x260   : > { %864 = vmatpush1.bf16.xpose.msra.mxu1 %v835_v57 }
 0x261   : > { %v1262_v59 = vpop.eup %1261 }
 0x262   : > { %v814_v6 = vmul.f32 %v1262_v59, %v1686_v26  ;;  %v813_v10 = vmul.f32 %v1262_v59, %v1680_v21 }
 0x263   : > { %v767_v25 = vpop.xlane.xlu0 %766 }
 0x264   : > { %v838_v7 = vpack.c.bf16 %v814_v6, %v812_v41  ;;  %1267 = vrcp.f32 %v767_v25  ;;  %v837_v38 = vpack.c.bf16 %v813_v10, %v811_v36 }
 0x266   : > { %865 = vmatprep.subr.bf16.mxu1 %v838_v7  ;;  %v770_v5 = vpop.xlane.xlu1 %769  ;;  %v1264_v27 = vpop.eup %1263 }
 0x267   : > { %1269 = vrcp.f32 %v770_v5  ;;  %v816_v44 = vmul.f32 %v1264_v27, %v1694_v28  ;;  %v815_v47 = vmul.f32 %v1264_v27, %v1692_v46 }
 0x268   : > { %866 = vmatpush1.bf16.xpose.msra.mxu1 %v837_v38 }
 0x269   : > { %v1266_v45 = vpop.eup %1265 }
 0x26a   : > { %v818_v19 = vmul.f32 %v1266_v45, %v1702_v56  ;;  %v817_v26 = vmul.f32 %v1266_v45, %v1696_v31 }
 0x26b   : > { %v773_v29 = vpop.xlane.xlu0 %772 }
 0x26c   : > { %1271 = vrcp.f32 %v773_v29  ;;  %v840_v21 = vpack.c.bf16 %v818_v19, %v816_v44  ;;  %v839_v49 = vpack.c.bf16 %v817_v26, %v815_v47 }
 0x26d   : > { %v776_v40 = vpop.xlane.xlu1 %775 }
 0x26e   : > { %867 = vmatprep.subr.bf16.mxu1 %v840_v21  ;;  %1273 = vrcp.f32 %v776_v40  ;;  %v1268_v54 = vpop.eup %1267 }
 0x26f   : > { %v820_v63 = vmul.f32 %v1268_v54, %v1710_v34  ;;  %v819_v1 = vmul.f32 %v1268_v54, %v1708_v52 }
 0x270   : > { %868 = vmatpush1.bf16.xpose.msra.mxu1 %v839_v49 }
 0x271   : > { %v1270_v60 = vpop.eup %1269 }
 0x272   : > { %v822_v28 = vmul.f32 %v1270_v60, %v1718_v9  ;;  %v821_v56 = vmul.f32 %v1270_v60, %v1712_v37 }
 0x273   : > { %v779_v0 = vpop.xlane.xlu0 %778 }
 0x274   : > { %1275 = vrcp.f32 %v779_v0  ;;  %v842_v31 = vpack.c.bf16 %v822_v28, %v820_v63  ;;  %v841_v4 = vpack.c.bf16 %v821_v56, %v819_v1 }
 0x275   : > { %v782_v2 = vpop.xlane.xlu1 %781 }
 0x276   : > { %v1272_v46 = vpop.eup %1271  ;;  %869 = vmatprep.subr.bf16.mxu1 %v842_v31  ;;  %1277 = vrcp.f32 %v782_v2 }
 0x277   : > { %v824_v33 = vmul.f32 %v1272_v46, %v1726_v18  ;;  %v823_v35 = vmul.f32 %v1272_v46, %v1724_v58  ;;  %v1180_v58 = vld [vmem:[%s1752_s15] ss:$8 sps:$4 sm:$0xff]   ;;  %s1376_s15 = smov [#allocation4]  }
 0x278   : > { %v1274_v51 = vpop.eup %1273  ;;  %870 = vmatpush1.bf16.xpose.msra.mxu1 %v841_v4  ;;  %s1283_s13 = sshll.u32 %s1376_s15, 4  ;;  %s1284_s13 = int_to_ptr.vmem [resolvable:$false] %s1283_s13 }
 0x279   : > { %v826_v34 = vmul.f32 %v1274_v51, %v1732_v61  ;;  %v825_v9 = vmul.f32 %v1274_v51, %v1728_v24  ;;  %s1285_s18 = scalar_lea.vmem %s1284_s13, 512  ;;  %p1286_p6 = scmp.lt.s32.totalorder %s1791_s5, %s1284_s13 }
 0x27a   : > { %p1287_p7 = scmp.lt.s32.totalorder %s1285_s18, %s1279_s14 }
 0x27b   : > { %v844_v37 = vpack.c.bf16 %v826_v34, %v824_v33  ;;  %v843_v53 = vpack.c.bf16 %v825_v9, %v823_v35 }
 0x27c   : > { %p1288_p10 = por %p1287_p7, %p1286_p6 }
 0x27d   : > { %871 = vmatprep.subr.bf16.mxu1 %v844_v37 }
 0x27e   : > { %v1276_v52 = vpop.eup %1275  ;;  %p1289_p11 = pnand %p1288_p10, %p1282_p5 }
 0x27f   : > { %v828_v20 = vmul.f32 %v1276_v52, %v1738_v22  ;;  %v827_v24 = vmul.f32 %v1276_v52, %v1736_v43  ;;  %v904_v22 = vld [vmem:[%s317_s21] sm:$0xff] }
 0x280   : > { %v1278_v55 = vpop.eup %1277  ;;  %872 = vmatpush1.bf16.xpose.msra.mxu1 %v843_v53 }
 0x281   : > { %v830_v18 = vmul.f32 %v1278_v55, %v1744_v32  ;;  %v829_v61 = vmul.f32 %v1278_v55, %v1740_v23 }
 0x283   : > { %v846_v42 = vpack.c.bf16 %v830_v18, %v828_v20  ;;  %v845_v17 = vpack.c.bf16 %v829_v61, %v827_v24 }
 0x285   : > { %873 = vmatprep.subr.bf16.mxu1 %v846_v42 }
 0x288   : > { %874 = vmatpush1.bf16.xpose.msra.mxu1 %v845_v17 }
 0x28f   : > { %892 = vmatmul.mubr.bf16.vlgmr.msra.gmra.mrb[0].mxu1 %v1180_v58 }
 0x362   : > { %v893_v8 = vpop.f32.mrb[0].mxu1 }
 0x363   : > { %v902_v23 = vmul.f32 %v901_v30, %v893_v8  ;;  %v895_v32 = vpop.f32.mrb[1].mxu1 }
 0x364   : > { %v896_v43 = vpop.f32.mrb[2].mxu1 }
 0x365   : > { %v906_v12 = vadd.f32 %v904_v22, %v902_v23  ;;  %v903_v13 = vmul.f32 %v901_v30, %v896_v43  ;;  %v898_v14 = vpop.f32.mrb[3].mxu1 }
 0x367   : > { %908 = vst [vmem:[%s362_s22] sm:$0xff] %v906_v12  ;;  %v907_v15 = vadd.f32 %v905_v11, %v903_v13 }
 0x369   : > { %909 = vst [vmem:[%s362_s22 + $0x8] sm:$0xff] %v907_v15 }
 0x36a   : > { %1292 = shalt.err (!%p1289_p11)
}
 0x36b   : > { %s1293_s17 = scalar_lea.hbm %s1796_s9, 256  ;;  %s1297_s21 = scalar_lea.hbm %s1856_s6, 1024 }
 0x36c   : > { %p1294_p12 = scmp.ne.s32.totalorder %s1796_s9, %s1293_s17  ;;  %p1298_p1 = scmp.lt.u32.totalorder %s1796_s9, %s1856_s6 }
 0x36d   : > { %p1299_p2 = scmp.lt.u32.totalorder %s1297_s21, %s1293_s17  ;;  %p1301_p4 = scmp.lt.u32.totalorder %s1293_s17, %s1796_s9 }
 0x36e   : > { %p1295_p13 = pnand %p1294_p12, %p1478_p8 }
 0x36f   : > { %p1300_p3 = por %p1299_p2, %p1298_p1 }
 0x370   : > { %p1296_p0 = pneg %p1295_p13 }
 0x371   : > { %p1302_p5 = por %p1301_p4, %p1300_p3 }
 0x373   : > { %p1303_p6 = pnand %p1302_p5, %p1296_p0 }
 0x375   : > { %1306 = shalt.err (!%p1303_p6)
}
 0x376   : > { %s1377_s25 = smov 128   ;;  %s1378_s26 = smov 256  }
 0x377   : > { %s1379_s14 = smov 8  }
 0x378   : > { %1095 = dma.vmem_to_hbm [thread:$0]  (%p1478_p8), %s1791_s5, 256, %s1796_s9, %s1798_s10, %s1377_s25, %s1378_s26, %s1379_s14  }
 0x379 PF: > { %p1101_p7 = scmp.ge.s32.totalorder %s1373_s29, 2  ;;  %s940_s15 = sand.u32 1, %s1345_s23  }
 0x37a   : > { %s941_s13 = scalar_lea.sflag [#allocation5], %s940_s15 }
 0x37b   : > { %p1098_p10 = pnand %p1101_p7, %p1482_p9 }
 0x37d   : > { %1340 = dma.done.wait (!%p1098_p10), %s941_s13, 256  }
 0x37e   : > { %1342 = vsyncadd (!%p1098_p10), %s941_s13, 4294967040  ;;  %s20_s29 = sadd.s32 1, %s1373_s29   ;;  %s1860_s23 = smov %s1349_s24 }
 0x37f   : > { %p17_p11 = scmp.ge.s32.totalorder %s20_s29, 6   ;;  %s1861_s24 = smov %s1353_s3 }
 0x380   : > { %s1862_s3 = smov %s1490_s16  ;;  %s1863_s25 = smov %s1365_s27 }
 0x381   : > { %s1864_s26 = smov %s1369_s28  ;;  %s1865_s27 = smov %s1868_s7 }
 0x382   : > { %s1866_s28 = smov %s1872_s8  ;;  %19 = sbr.rel (!%p17_p11) target bundleno = 7 (0x7), region = 131 }
 0x389   :  { %946 = vsyncpa [#allocation5], 1 }
 0x38a   :  { %948 = vsyncpa [#allocation5 + $0x1], 1 }

</bundles_post_ra>
